<compile_context>
chip_gen: v5e
topology: v5e:2x2
jax: 0.10.0
libtpu: 0.0.40
codegen_flags: <defaults>
</compile_context>

<pallas_src>
import jax
import jax.numpy as jnp
from jax.experimental import pallas as pl
from jax.experimental.pallas import tpu as pltpu


# ----------------------------------------------------------------------------
# Kernel
# ----------------------------------------------------------------------------
def _attention_kernel(g_ref, x_ref, wg_ref, wx_ref, aux_ref, out_ref):
    """One (batch, pixel-tile) grid step.

    g_ref  : (F_g,   TILE_P)   gating-signal channels for this pixel tile
    x_ref  : (F_l,   TILE_P)   skip-connection channels for this pixel tile
    wg_ref : (F_int, F_g)      BN-folded W_g (matmul form)
    wx_ref : (F_int, F_l)      BN-folded W_x (matmul form)
    aux_ref: (F_int, 3)        col0 = bg+bx (folded), col1 = w_psi, col2 = b_psi
    out_ref: (F_l,   TILE_P)
    """
    g = g_ref[...]
    x = x_ref[...]
    aux = aux_ref[...]

    # a = relu(Wg g + Wx x + b): two MXU matmuls (no in-kernel concat), f32 acc.
    a = (jnp.dot(wg_ref[...], g, preferred_element_type=jnp.float32)
         + jnp.dot(wx_ref[...], x, preferred_element_type=jnp.float32)
         + aux[:, 0:1])
    a = jnp.maximum(a, 0.0)                               # (F_int, TILE_P)

    # psi = sigmoid(w_psi . a + b_psi): weighted sublane reduce (XLU) + sigmoid (EUP).
    logit = jnp.sum(a * aux[:, 1:2], axis=0, keepdims=True) + aux[0:1, 2:3]
    psi = jax.nn.sigmoid(logit)                            # (1, TILE_P)

    # Gate x by psi (broadcast across channels); lane-dense store.
    out_ref[...] = (x.astype(jnp.float32) * psi).astype(out_ref.dtype)


# ----------------------------------------------------------------------------
# Tiling / hardware helpers
# ----------------------------------------------------------------------------
def _pad8(c):
    return ((c + 7) // 8) * 8


def _vmem_budget_bytes():
    """Generation-aware VMEM budget (v5e/v6e: 128 MiB phys, v7x: 64 MiB)."""
    phys = 64 << 20  # conservative default = v7x per-TensorCore physical VMEM
    try:
        phys = int(pltpu.get_tpu_info().vmem_capacity_bytes)
    except Exception:
        pass
    return min(64 << 20, phys // 2)  # leave headroom for compiler scratch


def _dimension_semantics():
    """Engage both TensorCores on v7x (CORE_PARALLEL on the batch axis)."""
    try:
        kind = jax.devices()[0].device_kind.lower()
        if "v7" in kind or "7x" in kind:
            return (pltpu.CORE_PARALLEL, "parallel")
    except Exception:
        pass
    return ("parallel", "parallel")


def _pick_tile_p(hw_pad, cap):
    """Largest multiple-of-128 divisor of hw_pad that fits the VMEM-derived cap."""
    cap = max(128, (cap // 128) * 128)
    if hw_pad <= cap:
        return hw_pad
    t = cap
    while t >= 128:
        if hw_pad % t == 0:
            return t
        t -= 128
    return 128


# ----------------------------------------------------------------------------
# Wrapper
# ----------------------------------------------------------------------------
def attention_block_pallas(g, x, params, *, tile_p=None):
    """g, x: NCHW arrays.  Returns x * psi in NCHW (dtype of x)."""
    N, F_g, H, W = g.shape
    Nx, F_l, Hx, Wx = x.shape
    assert (N, H, W) == (Nx, Hx, Wx)
    HW = H * W
    F_int, F_g_w = params["w_g"].shape
    assert F_g_w == F_g and params["w_x"].shape == (F_int, F_l)

    out_dtype = x.dtype
    itemsize = jnp.dtype(out_dtype).itemsize

    # NCHW -> (N, C, H*W): contiguous reshape, no transpose, no extra HBM pass.
    g3 = g.reshape(N, F_g, HW)
    x3 = x.reshape(N, F_l, HW)

    # Pad the pixel axis to a multiple of 128 so stores stay lane-dense.
    HW_pad = ((HW + 127) // 128) * 128
    if HW_pad != HW:
        pad = HW_pad - HW
        g3 = jnp.pad(g3, ((0, 0), (0, 0), (0, pad)))
        x3 = jnp.pad(x3, ((0, 0), (0, 0), (0, pad)))

    # Generation-aware tile size: as large as possible within the VMEM budget.
    vmem_budget = _vmem_budget_bytes()
    bytes_per_px = (_pad8(F_g) + 2 * _pad8(F_l)) * itemsize      # g-in + x-in + out
    tile_cap = min(32768, max(128, (vmem_budget // 2) // (2 * bytes_per_px)))
    if tile_p is None:
        tile_p = _pick_tile_p(HW_pad, tile_cap)
    assert HW_pad % tile_p == 0 and tile_p % 128 == 0

    grid = (N, HW_pad // tile_p)

    out3 = pl.pallas_call(
        _attention_kernel,
        out_shape=jax.ShapeDtypeStruct((N, F_l, HW_pad), out_dtype),
        grid_spec=pltpu.PrefetchScalarGridSpec(
            num_scalar_prefetch=0,
            grid=grid,
            in_specs=[
                pl.BlockSpec((None, F_g, tile_p), lambda n, p: (n, 0, p)),   # g
                pl.BlockSpec((None, F_l, tile_p), lambda n, p: (n, 0, p)),   # x
                pl.BlockSpec((F_int, F_g), lambda n, p: (0, 0)),             # W_g (resident)
                pl.BlockSpec((F_int, F_l), lambda n, p: (0, 0)),             # W_x (resident)
                pl.BlockSpec((F_int, 3), lambda n, p: (0, 0)),               # aux (resident)
            ],
            out_specs=pl.BlockSpec((None, F_l, tile_p), lambda n, p: (n, 0, p)),
        ),
        compiler_params=pltpu.CompilerParams(
            dimension_semantics=_dimension_semantics(),
            vmem_limit_bytes=int(vmem_budget)),
    )(g3, x3, params["w_g"], params["w_x"], params["aux"])

    if HW_pad != HW:
        out3 = out3[:, :, :HW]
    return out3.reshape(N, F_l, H, W)


# ----------------------------------------------------------------------------
# Parameters (BN folded, packed for the kernel)
# ----------------------------------------------------------------------------
def _fold_bn(w, b, gamma, beta, mean, var, eps=1e-5):
    """Fold inference-mode BatchNorm into a 1x1 conv (w: (C_in, C_out), b: (C_out,))."""
    scale = gamma / jnp.sqrt(var + eps)
    w_f = w * scale[None, :]
    b_f = (b - mean) * scale + beta
    return w_f, b_f


def make_params(F_g, F_l, F_int, key):
    """Deterministic synthetic parameters, BN-folded and packed for the kernel."""
    ks = jax.random.split(key, 9)
    f32 = jnp.float32

    wg = 0.1 * jax.random.normal(ks[0], (F_g, F_int), f32)
    bg = 0.1 * jax.random.normal(ks[1], (F_int,), f32)
    wx = 0.1 * jax.random.normal(ks[2], (F_l, F_int), f32)
    bx = 0.1 * jax.random.normal(ks[3], (F_int,), f32)
    wp = 0.1 * jax.random.normal(ks[4], (F_int, 1), f32)
    bp = 0.1 * jax.random.normal(ks[5], (1,), f32)

    def bn(c, k):
        gamma = 1.0 + 0.05 * jax.random.normal(k, (c,), f32)
        beta = 0.02 * jnp.arange(c, dtype=f32)
        mean = 0.01 * jnp.arange(c, dtype=f32)
        var = 1.0 + 0.1 * jnp.arange(c, dtype=f32)
        return gamma, beta, mean, var

    wg_f, bg_f = _fold_bn(wg, bg, *bn(F_int, ks[6]))
    wx_f, bx_f = _fold_bn(wx, bx, *bn(F_int, ks[7]))
    wp_f, bp_f = _fold_bn(wp, bp, *bn(1, ks[8]))

    # Pack:  w_g: (F_int, F_g),  w_x: (F_int, F_l),
    #        aux: (F_int, 3) = [bg+bx | w_psi | b_psi (replicated)]
    aux = jnp.stack(
        [bg_f + bx_f, wp_f[:, 0], jnp.full((F_int,), bp_f[0], f32)], axis=1)
    return {"w_g": wg_f.T, "w_x": wx_f.T, "aux": aux}


# ----------------------------------------------------------------------------
# Pure-JAX reference (same folded/packed params)
# ----------------------------------------------------------------------------
def attention_block_ref(g, x, params):
    N, F_g, H, W = g.shape
    F_l = x.shape[1]
    HW = H * W
    gf = g.reshape(N, F_g, HW).astype(jnp.float32)
    xf = x.reshape(N, F_l, HW).astype(jnp.float32)
    wg, wx, aux = params["w_g"], params["w_x"], params["aux"]
    a = (jnp.einsum("oc,ncp->nop", wg, gf)
         + jnp.einsum("oc,ncp->nop", wx, xf)
         + aux[:, 0][None, :, None])
    a = jnp.maximum(a, 0.0)
    logit = jnp.einsum("o,nop->np", aux[:, 1], a) + aux[0, 2]
    psi = jax.nn.sigmoid(logit)[:, None, :]               # (N, 1, HW)
    out = xf * psi
    return out.reshape(N, F_l, H, W).astype(x.dtype)


if __name__ == "__main__":
    F_g, F_l, F_int = 4, 4, 8
    N, H, W = 2, 16, 16

    key = jax.random.PRNGKey(0)
    kg, kx, kp = jax.random.split(key, 3)
    g = jax.random.normal(kg, (N, F_g, H, W), jnp.float32)
    x = jax.random.normal(kx, (N, F_l, H, W), jnp.float32)
    params = make_params(F_g, F_l, F_int, kp)

    out = attention_block_pallas(g, x, params)
    out = jax.block_until_ready(out)

    ref = attention_block_ref(g, x, params)
    assert out.shape == (N, F_l, H, W)
    assert jnp.allclose(out, ref, atol=1e-5, rtol=1e-5), "mismatch vs reference"

    print("KERNEL_OK")
</pallas_src>

<mosaic_0001>
module attributes {stable_mosaic.version = 11 : i64} {
  func.func @_attention_kernel(%arg0: i32, %arg1: i32, %arg2: memref<1x4x256xf32, #tpu.memory_space<vmem>>, %arg3: memref<1x4x256xf32, #tpu.memory_space<vmem>>, %arg4: memref<8x4xf32, #tpu.memory_space<vmem>>, %arg5: memref<8x4xf32, #tpu.memory_space<vmem>>, %arg6: memref<8x3xf32, #tpu.memory_space<vmem>>, %arg7: memref<1x4x256xf32, #tpu.memory_space<vmem>>) attributes {dimension_semantics = [#tpu.dimension_semantics<parallel>, #tpu.dimension_semantics<parallel>], iteration_bounds = array<i64: 2, 1>, scalar_prefetch = 0 : i64, scratch_operands = 0 : i64, tpu.core_type = #tpu.core_type<tc>, window_params = [{transform_indices = @transform_0, window_bounds = array<i64: 1, 4, 256>}, {transform_indices = @transform_1, window_bounds = array<i64: 1, 4, 256>}, {pipeline_mode = #tpu.pipeline_mode<synchronous>, transform_indices = @transform_2, window_bounds = array<i64: 8, 4>}, {pipeline_mode = #tpu.pipeline_mode<synchronous>, transform_indices = @transform_3, window_bounds = array<i64: 8, 4>}, {pipeline_mode = #tpu.pipeline_mode<synchronous>, transform_indices = @transform_4, window_bounds = array<i64: 8, 3>}, {transform_indices = @transform_5, window_bounds = array<i64: 1, 4, 256>}]} {
    %c0 = arith.constant 0 : index
    %c0_0 = arith.constant 0 : index
    %c0_1 = arith.constant 0 : index
    %0 = vector.load %arg2[%c0, %c0_0, %c0_1] : memref<1x4x256xf32, #tpu.memory_space<vmem>>, vector<1x4x256xf32>
    %1 = vector.shape_cast %0 : vector<1x4x256xf32> to vector<4x256xf32>
    %c0_2 = arith.constant 0 : index
    %c0_3 = arith.constant 0 : index
    %c0_4 = arith.constant 0 : index
    %2 = vector.load %arg3[%c0_2, %c0_3, %c0_4] : memref<1x4x256xf32, #tpu.memory_space<vmem>>, vector<1x4x256xf32>
    %3 = vector.shape_cast %2 : vector<1x4x256xf32> to vector<4x256xf32>
    %c0_5 = arith.constant 0 : index
    %c0_6 = arith.constant 0 : index
    %4 = vector.load %arg6[%c0_5, %c0_6] : memref<8x3xf32, #tpu.memory_space<vmem>>, vector<8x3xf32>
    %c0_7 = arith.constant 0 : index
    %c0_8 = arith.constant 0 : index
    %5 = vector.load %arg4[%c0_7, %c0_8] : memref<8x4xf32, #tpu.memory_space<vmem>>, vector<8x4xf32>
    %cst = arith.constant dense<0.000000e+00> : vector<8x256xf32>
    %6 = tpu.matmul %5, %1, %cst {dimension_numbers = #tpu.dot_dimension_numbers<[1], [0], [0], [1], [0, 0, 1, 1], [], []>} : vector<8x4xf32>, vector<4x256xf32>, vector<8x256xf32> -> vector<8x256xf32>
    %c0_9 = arith.constant 0 : index
    %c0_10 = arith.constant 0 : index
    %7 = vector.load %arg5[%c0_9, %c0_10] : memref<8x4xf32, #tpu.memory_space<vmem>>, vector<8x4xf32>
    %cst_11 = arith.constant dense<0.000000e+00> : vector<8x256xf32>
    %8 = tpu.matmul %7, %3, %cst_11 {dimension_numbers = #tpu.dot_dimension_numbers<[1], [0], [0], [1], [0, 0, 1, 1], [], []>} : vector<8x4xf32>, vector<4x256xf32>, vector<8x256xf32> -> vector<8x256xf32>
    %9 = arith.addf %6, %8 : vector<8x256xf32>
    %10 = vector.extract_strided_slice %4 {offsets = [0, 0], sizes = [8, 1], strides = [1, 1]} : vector<8x3xf32> to vector<8x1xf32>
    %11 = vector.broadcast %10 : vector<8x1xf32> to vector<8x256xf32>
    %12 = arith.addf %9, %11 : vector<8x256xf32>
    %cst_12 = arith.constant 0.000000e+00 : f32
    %13 = vector.broadcast %cst_12 : f32 to vector<8x256xf32>
    %14 = arith.maximumf %12, %13 : vector<8x256xf32>
    %15 = vector.extract_strided_slice %4 {offsets = [0, 1], sizes = [8, 1], strides = [1, 1]} : vector<8x3xf32> to vector<8x1xf32>
    %16 = vector.broadcast %15 : vector<8x1xf32> to vector<8x256xf32>
    %17 = arith.mulf %14, %16 : vector<8x256xf32>
    %cst_13 = arith.constant dense<0.000000e+00> : vector<256xf32>
    %18 = vector.multi_reduction <add>, %17, %cst_13 [0] : vector<8x256xf32> to vector<256xf32>
    %19 = vector.shape_cast %18 : vector<256xf32> to vector<1x256xf32>
    %20 = vector.extract_strided_slice %4 {offsets = [0, 2], sizes = [1, 1], strides = [1, 1]} : vector<8x3xf32> to vector<1x1xf32>
    %21 = vector.broadcast %20 : vector<1x1xf32> to vector<1x256xf32>
    %22 = arith.addf %19, %21 : vector<1x256xf32>
    %23 = arith.negf %22 : vector<1x256xf32>
    %24 = math.exp %23 : vector<1x256xf32>
    %cst_14 = arith.constant 1.000000e+00 : f32
    %25 = vector.broadcast %cst_14 : f32 to vector<1x256xf32>
    %26 = arith.addf %25, %24 : vector<1x256xf32>
    %27 = arith.divf %25, %26 : vector<1x256xf32>
    %28 = vector.broadcast %27 : vector<1x256xf32> to vector<4x256xf32>
    %29 = arith.mulf %3, %28 : vector<4x256xf32>
    %c0_15 = arith.constant 0 : index
    %c0_16 = arith.constant 0 : index
    %c0_17 = arith.constant 0 : index
    %30 = vector.load %arg7[%c0_15, %c0_16, %c0_17] : memref<1x4x256xf32, #tpu.memory_space<vmem>>, vector<1x4x256xf32>
    %31 = vector.shape_cast %30 : vector<1x4x256xf32> to vector<4x256xf32>
    %32 = vector.shape_cast %29 : vector<4x256xf32> to vector<1x4x256xf32>
    tpu.vector_store %arg7[%c0_15, %c0_16, %c0_17], %32 {strides = array<i32>} : memref<1x4x256xf32, #tpu.memory_space<vmem>>, vector<1x4x256xf32>,
    return
  }
  func.func @transform_0(%arg0: i32, %arg1: i32) -> (i32, i32, i32) {
    %c0_i32 = arith.constant 0 : i32
    %c0_i32_0 = arith.constant 0 : i32
    return %arg0, %c0_i32, %arg1 : i32, i32, i32
  }
  func.func @transform_1(%arg0: i32, %arg1: i32) -> (i32, i32, i32) {
    %c0_i32 = arith.constant 0 : i32
    %c0_i32_0 = arith.constant 0 : i32
    return %arg0, %c0_i32, %arg1 : i32, i32, i32
  }
  func.func @transform_2(%arg0: i32, %arg1: i32) -> (i32, i32) {
    %c0_i32 = arith.constant 0 : i32
    %c0_i32_0 = arith.constant 0 : i32
    %c0_i32_1 = arith.constant 0 : i32
    return %c0_i32, %c0_i32_0 : i32, i32
  }
  func.func @transform_3(%arg0: i32, %arg1: i32) -> (i32, i32) {
    %c0_i32 = arith.constant 0 : i32
    %c0_i32_0 = arith.constant 0 : i32
    %c0_i32_1 = arith.constant 0 : i32
    return %c0_i32, %c0_i32_0 : i32, i32
  }
  func.func @transform_4(%arg0: i32, %arg1: i32) -> (i32, i32) {
    %c0_i32 = arith.constant 0 : i32
    %c0_i32_0 = arith.constant 0 : i32
    %c0_i32_1 = arith.constant 0 : i32
    return %c0_i32, %c0_i32_0 : i32, i32
  }
  func.func @transform_5(%arg0: i32, %arg1: i32) -> (i32, i32, i32) {
    %c0_i32 = arith.constant 0 : i32
    %c0_i32_0 = arith.constant 0 : i32
    return %arg0, %c0_i32, %arg1 : i32, i32, i32
  }
}

</mosaic_0001>

<bundles_post_ra>
// kernel: tpu_custom_call.1
= control target key start
LH: loop header
LB: loop body
LE: loop exit
PB: predicated region body
PF: predicated region fallthrough
CT: control target
= control target key end

     0   :  { %10 = vsyncpa [#allocation3], 0  ;;  %s1010_s0 = inlined_call_operand.vmem [shape: f32[2,4,256], index: 0, kind: input, shape index: {}]   ;;  %s1011_s1 = inlined_call_operand.hbm [shape: f32[2,4,256], index: 1, kind: input, shape index: {}]   ;;  %s1012_s2 = inlined_call_operand.vmem [shape: f32[8,4], index: 2, kind: input, shape index: {}]   ;;  %s1013_s3 = inlined_call_operand.vmem [shape: f32[8,4], index: 3, kind: input, shape index: {}]   ;;  %s1014_s4 = inlined_call_operand.vmem [shape: f32[8,3], index: 4, kind: input, shape index: {}]   ;;  %s1015_s5 = inlined_call_operand.hbm [shape: f32[2,4,256], index: 5, kind: output, shape index: {}]  }
   0x1   :  { %12 = vsyncpa [#allocation3 + $0x1], 0 }
   0x2   :  { %13 = vsyncpa [#allocation4], 0 }
   0x3   :  { %15 = vsyncpa [#allocation4 + $0x1], 0  ;;  %s863_s18 = smov 0   ;;  %s865_s19 = smov 0  }
   0x4   :  { %s867_s20 = smov 0   ;;  %s869_s21 = smov 0  }
   0x5   :  { %s871_s22 = smov 0   ;;  %s873_s23 = smov 0  }
   0x6 LB: > { %s609_s24 = sadd.s32 4294967295, %s828_s23   ;;  %s610_s25 = sadd.s32 4294967294, %s828_s23   ;;  %s828_s23 = sphi %s873_s23, %s21_s23   ;;  %s824_s22 = sphi %s871_s22, %s1024_s22   ;;  %s820_s21 = sphi %s869_s21, %s1023_s21   ;;  %s816_s20 = sphi %s867_s20, %s1022_s20   ;;  %s812_s19 = sphi %s865_s19, %s1021_s19   ;;  %s808_s18 = sphi %s863_s18, %s1020_s18  }
   0x7   : > { %s33_s26 = sadd.s32 1, %s824_s22  ;;  %s70_s27 = sadd.s32 1, %s816_s20 }
   0x8   : > { %p35_p0 = scmp.ge.s32.totalorder %s33_s26, 2  ;;  %p77_p1 = scmp.ne.s32.totalorder %s816_s20, %s812_s19 }
   0x9   : > { %p78_p2 = scmp.eq.s32.totalorder %s828_s23, 0  ;;  %p83_p3 = scmp.ne.s32.totalorder %s812_s19, %s808_s18 }
   0xa   : > { %s1026_s26 = smov (%p35_p0, %s33_s26), 0  ;;  %p84_p5 = scmp.eq.s32.totalorder %s609_s24, 0 }
   0xb   : > { %p904_p4 = por %p78_p2, %p77_p1  ;;  %s65_s29 = ssub.s32 %s824_s22, %s1026_s26 }
   0xc   : > { %p172_p6 = scmp.eq.s32.totalorder %s609_s24, 1  ;;  %p68_p7 = scmp.eq.s32.totalorder %s65_s29, 0 }
   0xd   : > { %p910_p8 = por %p84_p5, %p83_p3  ;;  %p178_p10 = scmp.eq.s32.totalorder %s610_s25, 1 }
   0xe   : > { %p914_p9 = por %p172_p6, %p77_p1  ;;  %p612_p12 = scmp.ge.s32.totalorder %s828_s23, 2 }
   0xf   : > { %s919_s7 = scalar_select %p68_p7, %s816_s20, %s70_s27  }
  0x10   : > { %p921_p11 = por %p178_p10, %p83_p3  ;;  %p651_p13 = scmp.lt.s32.totalorder %s828_s23, 2 }
  0x11   : > { %s220_s9 = sand.u32 1, %s816_s20   ;;  %s636_s11 = sshll.u32 %s824_s22, 3 }
  0x12   : > { %s613_s10 = sshll.u32 %s220_s9, 3  ;;  %s231_s14 = scalar_lea.hbm %s1011_s1, %s636_s11 }
  0x13   : > { %s224_s15 = scalar_lea.vmem [#allocation2], %s613_s10  ;;  %s233_s17 = sshll.u32 %s231_s14, 4  ;;  %s234_s17 = int_to_ptr.hbm [resolvable:$true] %s233_s17 }
  0x14   : > { %s235_s16 = sshll.u32 %s224_s15, 4  ;;  %p644_p0 = pnand %p651_p13, %p904_p4  ;;  %s236_s16 = int_to_ptr.vmem [resolvable:$true] %s235_s16 }
  0x15   : > { %p616_p1 = scmp.ge.s32.totalorder %s828_s23, 1  ;;  %p240_p2 = scmp.lt.s32.totalorder %s828_s23, 3 }
  0x16   : > { %s221_s24 = scalar_lea.sflag [#allocation3], %s220_s9 }
  0x17   : > { %646 = dma.hbm_to_vmem [thread:$0]  (!%p644_p0), %s234_s17, 128, %s236_s16, %s221_s24  }
  0x18   : > { %p241_p3 = pnand %p616_p1, %p240_p2 }
  0x19   : > { %s937_s25 = sand.u32 (!%p241_p3), 1, %s812_s19  }
  0x1a   : > { %244 = sbr.rel (%p241_p3) target bundleno = 243 (0xf3), region = 40  ;;  %s617_s27 = sshll.u32 (!%p241_p3), %s937_s25, 3 }
  0x1b   : > { %s247_s29 = scalar_lea.sflag (!%p241_p3), [#allocation3], %s937_s25  ;;  %s250_s10 = scalar_lea.vmem (!%p241_p3), [#allocation2], %s617_s27 }
  0x1f   : > { %799 = dma.done.wait (%p910_p8), %s247_s29, 128  }
  0x20   : > { %801 = vsyncadd (%p910_p8), %s247_s29, 4294967168  ;;  %p288_p4 = scmp.lt.s32.totalorder %s820_s21, 1  ;;  %v830_v0 = vmov 0   ;;  %v831_v1 = vmov 2   ;;  %v949_v2 = vld [vmem:[%s250_s10] sm:$0xff]  ;;  %v301_v3 = vld [vmem:[%s1014_s4] sm:$0xff] }
  0x21   : > { %704 = vset.pattern.permute.xlu0 %v830_v0  ;;  %706 = vset.pattern.permute.xlu1 %v831_v1  ;;  %305 = vst [vmem:[#allocation1] ss:$2 sm:$0xff] %v949_v2  ;;  %vm312_vm0 = vcmask 1043456   ;;  %v303_v5 = vld [vmem:[%s1013_s3] sm:$0xff]  ;;  %vm308_vm1 = vcmask 31744   ;;  %v832_v8 = vmov 1  }
  0x22   : > { %s289_s28 = scalar_select %p288_p4, %s820_s21, 1  ;;  %410 = vperm.xlu0 %704, %v301_v3   ;;  %436 = vperm.xlu1 %706, %v301_v3   ;;  %v302_v9 = vld [vmem:[%s1012_s2] sm:$0xff] }
  0x23   : > { %s638_s29 = sshll.u32 %s820_s21, 3  ;;  %s286_s21 = scalar_lea.vmem [#allocation5], %s617_s27 }
  0x24   : > { %s637_s9 = sshll.u32 %s289_s28, 3  ;;  %s504_s11 = sshll.u32 %s286_s21, 4  ;;  %s505_s11 = int_to_ptr.vmem [resolvable:$true] %s504_s11 }
  0x25   : > { %s295_s14 = scalar_lea.vmem %s1010_s0, %s637_s9  ;;  %s502_s9 = scalar_lea.hbm %s1015_s5, %s638_s29 }
  0x26   : > { %v299_v4 = vld [vmem:[%s295_s14] sm:$0xff]  ;;  %s506_s12 = sshll.u32 %s502_s9, 4  ;;  %s489_s30 = scalar_lea.sflag [#allocation4], %s937_s25  ;;  %s507_s12 = int_to_ptr.hbm [resolvable:$true] %s506_s12 }
  0x27   : > { %s760_s13 = sshra.s32 %s507_s12, 4  ;;  %s766_s27 = scalar_lea.hbm %s1015_s5, 16  ;;  %s761_s13 = int_to_ptr.hbm [resolvable:$true] %s760_s13 }
  0x28   : > { %v306_v6 = vld.sshfl [vmem:[#allocation1] sm:$0xff pattern:$0x75316420]  ;;  %v307_v7 = vld.sshfl [vmem:[#allocation1 + $0x8] sm:$0xff pattern:$0x75316420]  ;;  %p767_p8 = scmp.lt.s32.totalorder %s761_s13, %s1015_s5 }
  0x29   : > { %358 = vst [vmem:[#allocation1] ss:$2 sm:$0xff] %v299_v4  ;;  %621 = vmatpush.msk.msra.mxu0 %vm312_vm0, %v306_v6  ;;  %623 = vmatpush.msk.msra.mxu1 %vm312_vm0, %v307_v7  ;;  %s762_s14 = scalar_lea.hbm %s761_s13, 8 }
  0x2a   : > { %622 = vmatmul.msk.f32.vlgmr.msra.gmra.mxu0 %vm308_vm1, %v303_v5  ;;  %624 = vmatmul.msk.f32.vlgmr.msra.gmra.mxu1 %vm308_vm1, %v303_v5  ;;  %p763_p5 = scmp.ne.s32.totalorder %s761_s13, %s762_s14  ;;  %p768_p10 = scmp.lt.s32.totalorder %s766_s27, %s762_s14 }
  0x2b   : > { %705 = vset.pattern.permute.xlu0 %v832_v8 }
  0x2c   : > { %418 = vperm.xlu0 %705, %v301_v3   ;;  %p764_p6 = pnand %p763_p5, %p914_p9  ;;  %p769_p13 = por %p768_p10, %p767_p8 }
  0x2e   : > { %p765_p7 = pneg %p764_p6 }
  0x30   : > { %v359_v10 = vld.sshfl [vmem:[#allocation1] sm:$0xff pattern:$0x75316420]  ;;  %v360_v11 = vld.sshfl [vmem:[#allocation1 + $0x8] sm:$0xff pattern:$0x75316420]  ;;  %p770_p0 = pnand %p769_p13, %p765_p7 }
  0x31   : > { %625 = vmatpush.msk.msra.mxu2 %vm312_vm0, %v359_v10  ;;  %627 = vmatpush.msk.msra.mxu3 %vm312_vm0, %v360_v11 }
  0x32   : > { %626 = vmatmul.msk.f32.vlgmr.msra.gmra.mxu2 %vm308_vm1, %v302_v9  ;;  %628 = vmatmul.msk.f32.vlgmr.msra.gmra.mxu3 %vm308_vm1, %v302_v9 }
  0x34   : > { %707 = vset.pattern.permute.xlu0 %v831_v1 }
  0x94   : > { %v411_v12 = vpop.permute.xlu0 %410  ;;  %v437_v36 = vpop.permute.xlu1 %436 }
  0x9e   : > { %v419_v21 = vpop.permute.xlu0 %418 }
  0xa7   : > { %v334_v13 = vpop.f32.mrf.mxu0  ;;  %v354_v14 = vpop.f32.mrf.mxu1 }
  0xb5   : > { %v385_v15 = vpop.f32.mrf.mxu2  ;;  %v405_v16 = vpop.f32.mrf.mxu3 }
  0xb6   : > { %v386_v17 = vadd.f32 %v385_v15, %v334_v13  ;;  %v406_v18 = vadd.f32 %v405_v16, %v354_v14 }
  0xb8   : > { %v413_v19 = vadd.f32 %v411_v12, %v386_v17  ;;  %v414_v20 = vadd.f32 %v411_v12, %v406_v18 }
  0xba   : > { %v415_v22 = vmax.f32 %v413_v19, 0.0  ;;  %v416_v23 = vmax.f32 %v414_v20, 0.0 }
  0xbc   : > { %v421_v24 = vmul.f32 %v419_v21, %v415_v22  ;;  %v422_v25 = vmul.f32 %v419_v21, %v416_v23 }
  0xbe   : > { %v423_v26 = vrot.slane %v421_v24, 4  ;;  %v429_v27 = vrot.slane %v422_v25, 4 }
  0xc0   : > { %v424_v28 = vadd.f32 %v423_v26, %v421_v24  ;;  %v430_v29 = vadd.f32 %v429_v27, %v422_v25 }
  0xc2   : > { %v425_v30 = vrot.slane %v424_v28, 2  ;;  %v431_v31 = vrot.slane %v430_v29, 2 }
  0xc4   : > { %v426_v32 = vadd.f32 %v425_v30, %v424_v28  ;;  %v432_v33 = vadd.f32 %v431_v31, %v430_v29 }
  0xc6   : > { %v427_v34 = vrot.slane %v426_v32, 1  ;;  %v433_v35 = vrot.slane %v432_v33, 1 }
  0xc8   : > { %v428_v37 = vadd.f32 %v427_v34, %v426_v32  ;;  %v434_v38 = vadd.f32 %v433_v35, %v432_v33 }
  0xca   : > { %v439_v39 = vadd.f32 %v437_v36, %v428_v37  ;;  %v440_v40 = vadd.f32 %v437_v36, %v434_v38 }
  0xcc   : > { %v629_v41 = vmul.f32 -1.442695, %v439_v39  ;;  %v630_v42 = vmul.f32 -1.442695, %v440_v40 }
  0xce   : > { %708 = vpow2.f32 %v629_v41 }
  0xcf   : > { %710 = vpow2.f32 %v630_v42 }
  0xd4   : > { %v709_v43 = vpop.eup %708 }
  0xd5   : > { %v711_v44 = vpop.eup %710  ;;  %v447_v45 = vadd.f32 1.0, %v709_v43 }
  0xd6   : > { %v448_v46 = vadd.f32 1.0, %v711_v44 }
  0xd7   : > { %712 = vrcp.f32 %v447_v45  ;;  %v460_v54 = vand.u32 2147483648, %v447_v45  ;;  %v458_v56 = vand.u32 2147483647, %v447_v45  ;;  %vm454_vm4 = vweird.f32 %v447_v45 }
  0xd8   : > { %714 = vrcp.f32 %v448_v46  ;;  %v475_v55 = vand.u32 2147483648, %v448_v46  ;;  %v473_v58 = vand.u32 2147483647, %v448_v46  ;;  %vm469_vm6 = vweird.f32 %v448_v46 }
  0xd9   : > { %v461_v61 = vor.u32 1.1754944e-38, %v460_v54  ;;  %vm459_vm8 = vcmp.eq.f32.partialorder %v458_v56, 8.507059e+37 }
  0xda   : > { %v476_v62 = vor.u32 1.1754944e-38, %v475_v55  ;;  %vm474_vm9 = vcmp.eq.f32.partialorder %v473_v58, 8.507059e+37 }
  0xdd   : > { %v713_v47 = vpop.eup %712 }
  0xde   : > { %v715_v48 = vpop.eup %714  ;;  %v450_v49 = vmul.f32 %v713_v47, %v447_v45  ;;  %vm455_vm2 = vweird.f32 %v713_v47 }
  0xdf   : > { %v465_v50 = vmul.f32 %v715_v48, %v448_v46  ;;  %vm470_vm3 = vweird.f32 %v715_v48  ;;  %vm456_vm5 = vmor %vm454_vm4, %vm455_vm2 }
  0xe0   : > { %v451_v51 = vsub.f32 1.0, %v450_v49  ;;  %vm471_vm7 = vmor %vm469_vm6, %vm470_vm3 }
  0xe1   : > { %v466_v52 = vsub.f32 1.0, %v465_v50 }
  0xe2   : > { %v452_v53 = vmul.f32 %v713_v47, %v451_v51 }
  0xe3   : > { %v467_v57 = vmul.f32 %v715_v48, %v466_v52 }
  0xe4   : > { %v453_v59 = vadd.f32 %v713_v47, %v452_v53 }
  0xe5   : > { %v468_v60 = vadd.f32 %v715_v48, %v467_v57 }
  0xe6   : > { %v457_v63 = vsel %vm456_vm5, %v713_v47, %v453_v59 }
  0xe7   : > { %v472_v0 = vsel %vm471_vm7, %v715_v48, %v468_v60  ;;  %v462_v1 = vsel %vm459_vm8, %v461_v61, %v457_v63 }
  0xe8   : > { %v477_v3 = vsel %vm474_vm9, %v476_v62, %v472_v0  ;;  %v479_v5 = vperm.slane %v462_v1, 0 }
  0xe9   : > { %v480_v4 = vperm.slane %v477_v3, 0 }
  0xeb   : > { %v483_v6 = vrot.slane %v480_v4, 4 }
  0xed   : > { %v484_v7 = vsel %vm312_vm0, %v479_v5, %v483_v6 }
  0xee   : > { %v486_v8 = vmul.f32 %v484_v7, %v949_v2 }
  0xf0   : > { %487 = vst [vmem:[%s286_s21] sm:$0xff] %v486_v8 }
  0xf1   : > { %773 = shalt.err (!%p770_p0)
}
  0xf2   : > { %641 = dma.vmem_to_hbm [thread:$0]  (%p914_p9), %s505_s11, 128, %s507_s12, %s489_s30  }
  0xf3 PF: > { %s518_s25 = sand.u32 1, %s808_s18   ;;  %p648_p1 = pnand %p612_p12, %p921_p11 }
  0xf4   : > { %s519_s29 = scalar_lea.sflag [#allocation4], %s518_s25 }
  0xf5   : > { %p649_p2 = pneg %p648_p1 }
  0xf7   : > { %803 = dma.done.wait (%p649_p2), %s519_s29, 128  }
  0xf8   : > { %805 = vsyncadd (%p649_p2), %s519_s29, 4294967168  ;;  %s21_s23 = sadd.s32 1, %s828_s23   ;;  %s1020_s18 = smov %s812_s19 }
  0xf9   : > { %p18_p3 = scmp.ge.s32.totalorder %s21_s23, 4   ;;  %s1021_s19 = smov %s816_s20 }
  0xfa   : > { %s1022_s20 = smov %s919_s7  ;;  %s1023_s21 = smov %s824_s22 }
  0xfb   : > { %s1024_s22 = smov %s1026_s26  ;;  %20 = sbr.rel (!%p18_p3) target bundleno = 6 (0x6), region = 88 }
 0x100   :  { %525 = vsyncpa [#allocation3], 1 }
 0x101   :  { %527 = vsyncpa [#allocation3 + $0x1], 1 }
 0x102   :  { %528 = vsyncpa [#allocation4], 1 }
 0x103   :  { %530 = vsyncpa [#allocation4 + $0x1], 1 }

</bundles_post_ra>
